<compile_context>
chip_gen: v7x
topology: tpu7x:2x2x1
jax: 0.10.0
libtpu: 0.0.40
codegen_flags: <defaults>
</compile_context>

<pallas_src>
import functools

import jax
import jax.numpy as jnp
from jax.experimental import pallas as pl
from jax.experimental.pallas import tpu as pltpu

_OUT_PAD = 128  # lane-dense padded width of the final layer


def _mlp_kernel(x_ref, w1_ref, w2_ref, w3_ref, w4_ref, bias_ref, o_ref):
    # Packed biases: one tiny (4, 128) f32 load, sliced in vregs (2-D slices
    # broadcast cleanly against (TB, N) activations).
    b = bias_ref[...]
    b1 = b[0:1, :]        # (1, 128)
    b2 = b[1:2, :64]      # (1, 64)
    b3 = b[2:3, :32]      # (1, 32)
    b4 = b[3:4, :]        # (1, 128) zero beyond column 2

    # layer1 + ReLU   (bf16 operands -> f32 accumulate on the MXU)
    h = jnp.dot(x_ref[...], w1_ref[...], preferred_element_type=jnp.float32)
    h = jnp.maximum(h + b1, 0.0)
    # additional_layer + ReLU
    h = jnp.dot(h.astype(jnp.bfloat16), w2_ref[...],
                preferred_element_type=jnp.float32)
    h = jnp.maximum(h + b2, 0.0)
    # layer2 + ReLU
    h = jnp.dot(h.astype(jnp.bfloat16), w3_ref[...],
                preferred_element_type=jnp.float32)
    h = jnp.maximum(h + b3, 0.0)
    # layer3 (no activation), lane-dense (TB, 128) store
    h = jnp.dot(h.astype(jnp.bfloat16), w4_ref[...],
                preferred_element_type=jnp.float32)
    o_ref[...] = (h + b4).astype(o_ref.dtype)


def _choose_batch_tile(batch):
    # Fill the MXU M dimension when the batch is large enough; otherwise just
    # round up to the sublane multiple (8).
    if batch >= 256:
        return 256
    if batch >= 128:
        return 128
    return max(8, ((batch + 7) // 8) * 8)


@functools.partial(jax.jit, static_argnames=("tb",))
def audio_classifier_forward(x, params, *, tb=None):
    """x: (B, in_features) f32. params: dict of (in,out) weights + (1,out) biases."""
    B, in_features = x.shape
    out_dim = params["w4"].shape[1]

    if tb is None:
        tb = _choose_batch_tile(B)
    b_pad = ((B + tb - 1) // tb) * tb

    # bf16 MXU operands (halves activation/weight DMA bytes); accumulation
    # stays f32 inside the kernel.
    x_p = jnp.zeros((b_pad, in_features), jnp.bfloat16)
    x_p = x_p.at[:B].set(x.astype(jnp.bfloat16))
    w1 = params["w1"].astype(jnp.bfloat16)
    w2 = params["w2"].astype(jnp.bfloat16)
    w3 = params["w3"].astype(jnp.bfloat16)
    # Lane-dense final layer: zero-pad 2 -> 128 output columns.
    w4 = jnp.zeros((params["w4"].shape[0], _OUT_PAD), jnp.bfloat16)
    w4 = w4.at[:, :out_dim].set(params["w4"].astype(jnp.bfloat16))

    # Single packed bias buffer (4, 128) f32 -> one DMA instead of four.
    bias = jnp.zeros((4, _OUT_PAD), jnp.float32)
    bias = bias.at[0, :128].set(params["b1"][0])
    bias = bias.at[1, :64].set(params["b2"][0])
    bias = bias.at[2, :32].set(params["b3"][0])
    bias = bias.at[3, :out_dim].set(params["b4"][0])

    const = lambda a: pl.BlockSpec(a.shape, lambda i: (0,) * a.ndim)

    out = pl.pallas_call(
        _mlp_kernel,
        out_shape=jax.ShapeDtypeStruct((b_pad, _OUT_PAD), jnp.float32),
        grid_spec=pl.GridSpec(
            grid=(b_pad // tb,),
            in_specs=[
                pl.BlockSpec((tb, in_features), lambda i: (i, 0)),  # x: streamed
                const(w1), const(w2), const(w3), const(w4),          # resident
                const(bias),                                         # resident
            ],
            out_specs=pl.BlockSpec((tb, _OUT_PAD), lambda i: (i, 0)),
        ),
        compiler_params=pltpu.CompilerParams(
            dimension_semantics=("parallel",),  # megacore sharding on v7x
        ),
    )(x_p, w1, w2, w3, w4, bias)

    return out[:B, :out_dim]


def init_params(in_features, key):
    """Deterministic init matching PyTorch Linear shapes.

    torch.nn.Linear(in, out) has weight (out, in), bias (out,); here we store
    the transposed weight (in, out) and bias as (1, out) for broadcasting.
    Uses uniform(-1/sqrt(in), 1/sqrt(in)) like PyTorch's default init.
    """
    dims = [(in_features, 128), (128, 64), (64, 32), (32, 2)]
    params = {}
    for idx, (fan_in, fan_out) in enumerate(dims, start=1):
        key, kw, kb = jax.random.split(key, 3)
        bound = 1.0 / jnp.sqrt(jnp.float32(fan_in))
        params[f"w{idx}"] = jax.random.uniform(
            kw, (fan_in, fan_out), jnp.float32, minval=-bound, maxval=bound)
        params[f"b{idx}"] = jax.random.uniform(
            kb, (1, fan_out), jnp.float32, minval=-bound, maxval=bound)
    return params


def reference_forward(x, params):
    """Pure-JAX reference emulating the kernel math (bf16 operands, f32 accum)."""
    def bdot(a, w):
        return jnp.dot(a.astype(jnp.bfloat16), w.astype(jnp.bfloat16),
                       preferred_element_type=jnp.float32)

    h = jnp.maximum(bdot(x, params["w1"]) + params["b1"], 0.0)
    h = jnp.maximum(bdot(h, params["w2"]) + params["b2"], 0.0)
    h = jnp.maximum(bdot(h, params["w3"]) + params["b3"], 0.0)
    return bdot(h, params["w4"]) + params["b4"]


if __name__ == "__main__":
    batch_size = 8
    in_features = 32

    key = jax.random.PRNGKey(0)
    key, kx = jax.random.split(key)
    x = jax.random.normal(kx, (batch_size, in_features), jnp.float32)
    params = init_params(in_features, key)

    out = audio_classifier_forward(x, params)
    jax.block_until_ready(out)

    ref = reference_forward(x, params)
    assert out.shape == (batch_size, 2), out.shape
    assert jnp.allclose(out, ref, atol=1e-2, rtol=1e-2), "mismatch vs reference"

    print("KERNEL_OK")
</pallas_src>

<mosaic_0001>
module attributes {stable_mosaic.version = 11 : i64} {
  func.func @_mlp_kernel(%arg0: i32, %arg1: memref<8x32xbf16, #tpu.memory_space<vmem>>, %arg2: memref<32x128xbf16, #tpu.memory_space<vmem>>, %arg3: memref<128x64xbf16, #tpu.memory_space<vmem>>, %arg4: memref<64x32xbf16, #tpu.memory_space<vmem>>, %arg5: memref<32x128xbf16, #tpu.memory_space<vmem>>, %arg6: memref<4x128xf32, #tpu.memory_space<vmem>>, %arg7: memref<8x128xf32, #tpu.memory_space<vmem>>) attributes {dimension_semantics = [#tpu.dimension_semantics<parallel>], iteration_bounds = array<i64: 1>, scalar_prefetch = 0 : i64, scratch_operands = 0 : i64, tpu.core_type = #tpu.core_type<tc>, window_params = [{transform_indices = @transform_0, window_bounds = array<i64: 8, 32>}, {pipeline_mode = #tpu.pipeline_mode<synchronous>, transform_indices = @transform_1, window_bounds = array<i64: 32, 128>}, {pipeline_mode = #tpu.pipeline_mode<synchronous>, transform_indices = @transform_2, window_bounds = array<i64: 128, 64>}, {pipeline_mode = #tpu.pipeline_mode<synchronous>, transform_indices = @transform_3, window_bounds = array<i64: 64, 32>}, {pipeline_mode = #tpu.pipeline_mode<synchronous>, transform_indices = @transform_4, window_bounds = array<i64: 32, 128>}, {pipeline_mode = #tpu.pipeline_mode<synchronous>, transform_indices = @transform_5, window_bounds = array<i64: 4, 128>}, {transform_indices = @transform_6, window_bounds = array<i64: 8, 128>}]} {
    %c0 = arith.constant 0 : index
    %c0_0 = arith.constant 0 : index
    %0 = vector.load %arg6[%c0, %c0_0] : memref<4x128xf32, #tpu.memory_space<vmem>>, vector<4x128xf32>
    %1 = vector.extract_strided_slice %0 {offsets = [0, 0], sizes = [1, 128], strides = [1, 1]} : vector<4x128xf32> to vector<1x128xf32>
    %2 = vector.extract_strided_slice %0 {offsets = [1, 0], sizes = [1, 64], strides = [1, 1]} : vector<4x128xf32> to vector<1x64xf32>
    %3 = vector.extract_strided_slice %0 {offsets = [2, 0], sizes = [1, 32], strides = [1, 1]} : vector<4x128xf32> to vector<1x32xf32>
    %4 = vector.extract_strided_slice %0 {offsets = [3, 0], sizes = [1, 128], strides = [1, 1]} : vector<4x128xf32> to vector<1x128xf32>
    %c0_1 = arith.constant 0 : index
    %c0_2 = arith.constant 0 : index
    %5 = vector.load %arg1[%c0_1, %c0_2] : memref<8x32xbf16, #tpu.memory_space<vmem>>, vector<8x32xbf16>
    %c0_3 = arith.constant 0 : index
    %c0_4 = arith.constant 0 : index
    %6 = vector.load %arg2[%c0_3, %c0_4] : memref<32x128xbf16, #tpu.memory_space<vmem>>, vector<32x128xbf16>
    %cst = arith.constant dense<0.000000e+00> : vector<8x128xf32>
    %7 = tpu.matmul %5, %6, %cst {dimension_numbers = #tpu.dot_dimension_numbers<[1], [0], [0], [1], [0, 0, 1, 1], [], []>} : vector<8x32xbf16>, vector<32x128xbf16>, vector<8x128xf32> -> vector<8x128xf32>
    %8 = vector.broadcast %1 : vector<1x128xf32> to vector<8x128xf32>
    %9 = arith.addf %7, %8 : vector<8x128xf32>
    %cst_5 = arith.constant 0.000000e+00 : f32
    %10 = vector.broadcast %cst_5 : f32 to vector<8x128xf32>
    %11 = arith.maximumf %9, %10 : vector<8x128xf32>
    %12 = arith.truncf %11 : vector<8x128xf32> to vector<8x128xbf16>
    %c0_6 = arith.constant 0 : index
    %c0_7 = arith.constant 0 : index
    %13 = vector.load %arg3[%c0_6, %c0_7] : memref<128x64xbf16, #tpu.memory_space<vmem>>, vector<128x64xbf16>
    %cst_8 = arith.constant dense<0.000000e+00> : vector<8x64xf32>
    %14 = tpu.matmul %12, %13, %cst_8 {dimension_numbers = #tpu.dot_dimension_numbers<[1], [0], [0], [1], [0, 0, 1, 1], [], []>} : vector<8x128xbf16>, vector<128x64xbf16>, vector<8x64xf32> -> vector<8x64xf32>
    %15 = vector.broadcast %2 : vector<1x64xf32> to vector<8x64xf32>
    %16 = arith.addf %14, %15 : vector<8x64xf32>
    %cst_9 = arith.constant 0.000000e+00 : f32
    %17 = vector.broadcast %cst_9 : f32 to vector<8x64xf32>
    %18 = arith.maximumf %16, %17 : vector<8x64xf32>
    %19 = arith.truncf %18 : vector<8x64xf32> to vector<8x64xbf16>
    %c0_10 = arith.constant 0 : index
    %c0_11 = arith.constant 0 : index
    %20 = vector.load %arg4[%c0_10, %c0_11] : memref<64x32xbf16, #tpu.memory_space<vmem>>, vector<64x32xbf16>
    %cst_12 = arith.constant dense<0.000000e+00> : vector<8x32xf32>
    %21 = tpu.matmul %19, %20, %cst_12 {dimension_numbers = #tpu.dot_dimension_numbers<[1], [0], [0], [1], [0, 0, 1, 1], [], []>} : vector<8x64xbf16>, vector<64x32xbf16>, vector<8x32xf32> -> vector<8x32xf32>
    %22 = vector.broadcast %3 : vector<1x32xf32> to vector<8x32xf32>
    %23 = arith.addf %21, %22 : vector<8x32xf32>
    %cst_13 = arith.constant 0.000000e+00 : f32
    %24 = vector.broadcast %cst_13 : f32 to vector<8x32xf32>
    %25 = arith.maximumf %23, %24 : vector<8x32xf32>
    %26 = arith.truncf %25 : vector<8x32xf32> to vector<8x32xbf16>
    %c0_14 = arith.constant 0 : index
    %c0_15 = arith.constant 0 : index
    %27 = vector.load %arg5[%c0_14, %c0_15] : memref<32x128xbf16, #tpu.memory_space<vmem>>, vector<32x128xbf16>
    %cst_16 = arith.constant dense<0.000000e+00> : vector<8x128xf32>
    %28 = tpu.matmul %26, %27, %cst_16 {dimension_numbers = #tpu.dot_dimension_numbers<[1], [0], [0], [1], [0, 0, 1, 1], [], []>} : vector<8x32xbf16>, vector<32x128xbf16>, vector<8x128xf32> -> vector<8x128xf32>
    %29 = vector.broadcast %4 : vector<1x128xf32> to vector<8x128xf32>
    %30 = arith.addf %28, %29 : vector<8x128xf32>
    %c0_17 = arith.constant 0 : index
    %c0_18 = arith.constant 0 : index
    %31 = vector.load %arg7[%c0_17, %c0_18] : memref<8x128xf32, #tpu.memory_space<vmem>>, vector<8x128xf32>
    tpu.vector_store %arg7[%c0_17, %c0_18], %30 {strides = array<i32>} : memref<8x128xf32, #tpu.memory_space<vmem>>, vector<8x128xf32>,
    return
  }
  func.func @transform_0(%arg0: i32) -> (i32, i32) {
    %c0_i32 = arith.constant 0 : i32
    %c0_i32_0 = arith.constant 0 : i32
    return %arg0, %c0_i32 : i32, i32
  }
  func.func @transform_1(%arg0: i32) -> (i32, i32) {
    %c0_i32 = arith.constant 0 : i32
    %c0_i32_0 = arith.constant 0 : i32
    %c0_i32_1 = arith.constant 0 : i32
    return %c0_i32, %c0_i32_0 : i32, i32
  }
  func.func @transform_2(%arg0: i32) -> (i32, i32) {
    %c0_i32 = arith.constant 0 : i32
    %c0_i32_0 = arith.constant 0 : i32
    %c0_i32_1 = arith.constant 0 : i32
    return %c0_i32, %c0_i32_0 : i32, i32
  }
  func.func @transform_3(%arg0: i32) -> (i32, i32) {
    %c0_i32 = arith.constant 0 : i32
    %c0_i32_0 = arith.constant 0 : i32
    %c0_i32_1 = arith.constant 0 : i32
    return %c0_i32, %c0_i32_0 : i32, i32
  }
  func.func @transform_4(%arg0: i32) -> (i32, i32) {
    %c0_i32 = arith.constant 0 : i32
    %c0_i32_0 = arith.constant 0 : i32
    %c0_i32_1 = arith.constant 0 : i32
    return %c0_i32, %c0_i32_0 : i32, i32
  }
  func.func @transform_5(%arg0: i32) -> (i32, i32) {
    %c0_i32 = arith.constant 0 : i32
    %c0_i32_0 = arith.constant 0 : i32
    %c0_i32_1 = arith.constant 0 : i32
    return %c0_i32, %c0_i32_0 : i32, i32
  }
  func.func @transform_6(%arg0: i32) -> (i32, i32) {
    %c0_i32 = arith.constant 0 : i32
    %c0_i32_0 = arith.constant 0 : i32
    return %arg0, %c0_i32 : i32, i32
  }
}

</mosaic_0001>

<bundles_post_ra>
// kernel: audio_classifier_forward.1
= control target key start
LH: loop header
LB: loop body
LE: loop exit
PB: predicated region body
PF: predicated region fallthrough
CT: control target
= control target key end

     0   :  { %v457_v0 = vmov 0.0   ;;  %vm458_vm0 = vmmov 0   ;;  %vm46_vm1 = vcmask 261120   ;;  %v30_v14 = vlaneseq  ;;  %s577_s1 = inlined_call_operand.vmem [shape: bf16[32,128], index: 1, kind: input, shape index: {}]   ;;  %s578_s2 = inlined_call_operand.vmem [shape: bf16[128,64], index: 2, kind: input, shape index: {}]   ;;  %s579_s0 = inlined_call_operand.vmem [shape: bf16[8,32], index: 0, kind: input, shape index: {}]   ;;  %s580_s3 = inlined_call_operand.vmem [shape: bf16[64,32], index: 3, kind: input, shape index: {}]   ;;  %s581_s5 = inlined_call_operand.vmem [shape: f32[4,128], index: 5, kind: input, shape index: {}]   ;;  %s582_s4 = inlined_call_operand.vmem [shape: bf16[32,128], index: 4, kind: input, shape index: {}]   ;;  %s583_s6 = inlined_call_operand.vmem [shape: f32[8,128], index: 6, kind: output, shape index: {}]  }
   0x1   :  { %391 = vmatprep.subr.bf16.mxu0 %v457_v0  ;;  %v441_v1 = vld [vmem:[%s577_s1] sm:$0xff]   ;;  %395 = vmatprep.mubr.msk.bf16.mxu0 %vm458_vm0, %v457_v0  ;;  %v442_v2 = vld [vmem:[%s577_s1 + $0x8] sm:$0xff]   ;;  %v445_v6 = vld [vmem:[%s578_s2 + $0x10] sm:$0xff]   ;;  %vm238_vm2 = vcmask 523264  }
   0x2   :  { %399 = vmatprep.subr.bf16.mxu1 %v457_v0  ;;  %415 = vmatprep.mubr.msk.bf16.mxu1 %vm458_vm0, %v457_v0  ;;  %v443_v3 = vld [vmem:[%s578_s2] sm:$0xff]   ;;  %v444_v4 = vld [vmem:[%s578_s2 + $0x8] sm:$0xff]   ;;  %v446_v7 = vld [vmem:[%s578_s2 + $0x18] sm:$0xff]   ;;  %v31_v15 = vshrl.u32 %v30_v14, 7 }
   0x3   :  { %392 = vmatpush3.bf16.msra.mxu0 %v441_v1  ;;  %400 = vmatpush3.bf16.msra.mxu1 %v443_v3  ;;  %v25_v5 = vld [vmem:[%s579_s0] sm:$0xf]  ;;  %v448_v9 = vld [vmem:[%s578_s2 + $0x28] sm:$0xff]   ;;  %v449_v10 = vld [vmem:[%s578_s2 + $0x30] sm:$0xff]  }
   0x4   :  { %393 = vmatprep.subr.bf16.mxu0 %v457_v0  ;;  %401 = vmatprep.subr.bf16.mxu1 %v457_v0  ;;  %v447_v8 = vld [vmem:[%s578_s2 + $0x20] sm:$0xff]   ;;  %v450_v11 = vld [vmem:[%s578_s2 + $0x38] sm:$0xff]   ;;  %v452_v13 = vld [vmem:[%s580_s3 + $0x8] sm:$0xff]   ;;  %v32_v16 = vsub.s32 0, %v31_v15  ;;  %v110_v28 = vsub.s32 1, %v31_v15  ;;  %v212_v39 = vsub.s32 2, %v31_v15 }
   0x5   :  { %v451_v12 = vld [vmem:[%s580_s3] sm:$0xff]   ;;  %v453_v26 = vld [vmem:[%s580_s3 + $0x10] sm:$0xff]   ;;  %v454_v27 = vld [vmem:[%s580_s3 + $0x18] sm:$0xff]   ;;  %v290_v48 = vsub.s32 3, %v31_v15 }
   0x6   :  { %v24_v17 = vld [vmem:[%s581_s5] sm:$0xf]  ;;  %v456_v38 = vld [vmem:[%s582_s4 + $0x8] sm:$0xff]  }
   0x7   :  { %394 = vmatpush3.bf16.msra.mxu0 %v442_v2  ;;  %402 = vmatpush3.bf16.msra.mxu1 %v444_v4  ;;  %v33_v18 = vrot.slane %v24_v17, %v32_v16  ;;  %v111_v29 = vrot.slane %v24_v17, %v110_v28  ;;  %v455_v36 = vld [vmem:[%s582_s4] sm:$0xff]   ;;  %v213_v40 = vrot.slane %v24_v17, %v212_v39 }
   0x8   :  { %419 = vmatprep.subr.bf16.mxu0 %v457_v0  ;;  %403 = vmatprep.subr.bf16.mxu1 %v457_v0  ;;  %v291_v49 = vrot.slane %v24_v17, %v290_v48 }
   0xa   :  { %396 = vmatmul.mubr.msk.bf16.vlgmr.msra.gmra.mrb[0].mxu0 %vm46_vm1, %v25_v5 }
   0xb   :  { %427 = vmatprep.mubr.msk.bf16.mxu0 %vm458_vm0, %v457_v0  ;;  %404 = vmatpush3.bf16.msra.mxu1 %v445_v6 }
   0xc   :  { %405 = vmatprep.subr.bf16.mxu1 %v457_v0  ;;  %420 = vmatpush3.bf16.msra.mxu0 %v451_v12 }
   0xd   :  { %421 = vmatprep.subr.bf16.mxu0 %v457_v0 }
   0xf   :  { %406 = vmatpush3.bf16.msra.mxu1 %v446_v7 }
  0x10   :  { %407 = vmatprep.subr.bf16.mxu1 %v457_v0  ;;  %422 = vmatpush3.bf16.msra.mxu0 %v452_v13 }
  0x11   :  { %423 = vmatprep.subr.bf16.mxu0 %v457_v0 }
  0x13   :  { %408 = vmatpush3.bf16.msra.mxu1 %v447_v8 }
  0x14   :  { %409 = vmatprep.subr.bf16.mxu1 %v457_v0  ;;  %424 = vmatpush3.bf16.msra.mxu0 %v453_v26 }
  0x15   :  { %425 = vmatprep.subr.bf16.mxu0 %v457_v0 }
  0x17   :  { %410 = vmatpush3.bf16.msra.mxu1 %v448_v9 }
  0x18   :  { %411 = vmatprep.subr.bf16.mxu1 %v457_v0  ;;  %426 = vmatpush3.bf16.msra.mxu0 %v454_v27 }
  0x19   :  { %431 = vmatprep.subr.bf16.mxu0 %v457_v0 }
  0x1b   :  { %412 = vmatpush3.bf16.msra.mxu1 %v449_v10 }
  0x1c   :  { %413 = vmatprep.subr.bf16.mxu1 %v457_v0 }
  0x1f   :  { %414 = vmatpush3.bf16.msra.mxu1 %v450_v11 }
  0xdd   :  { %v84_v19 = vpop.f32.mrb[0].mxu0 }
  0xde   :  { %v85_v20 = vadd.f32 %v84_v19, %v33_v18  ;;  %v397_v21 = vpop.f32.mrb[1].mxu0 }
  0xdf   :  { %v87_v22 = vpop.f32.mrb[2].mxu0 }
  0xe0   :  { %v90_v23 = vmax.f32 %v85_v20, 0.0  ;;  %v398_v24 = vpop.f32.mrb[3].mxu0 }
  0xe2   :  { %v91_v25 = vpack.c.bf16 %v90_v23, %v90_v23 }
  0xe4   :  { %416 = vmatmul.mubr.bf16.vlgmr.msra.gmra.mrb[0].mxu1 %v91_v25 }
 0x1b7   :  { %v194_v30 = vpop.f32.mrb[0].mxu1 }
 0x1b8   :  { %v195_v31 = vadd.f32 %v194_v30, %v111_v29  ;;  %v417_v32 = vpop.f32.mrb[1].mxu1 }
 0x1b9   :  { %v197_v33 = vpop.f32.mrb[2].mxu1 }
 0x1ba   :  { %v200_v34 = vmax.f32 %v195_v31, 0.0  ;;  %v418_v35 = vpop.f32.mrb[3].mxu1 }
 0x1bc   :  { %v201_v37 = vpack.c.bf16 %v200_v34, %v200_v34 }
 0x1be   :  { %428 = vmatmul.mubr.msk.bf16.vlgmr.msra.gmra.mrb[4].mxu0 %vm238_vm2, %v201_v37 }
 0x1bf   :  { %432 = vmatpush3.bf16.msra.mxu0 %v455_v36  ;;  %435 = vmatprep.mubr.msk.bf16.mxu0 %vm458_vm0, %v457_v0 }
 0x1c0   :  { %433 = vmatprep.subr.bf16.mxu0 %v457_v0 }
 0x1c3   :  { %434 = vmatpush3.bf16.msra.mxu0 %v456_v38 }
 0x291   :  { %v276_v41 = vpop.f32.mrb[4].mxu0 }
 0x292   :  { %v277_v42 = vadd.f32 %v276_v41, %v213_v40  ;;  %v429_v43 = vpop.f32.mrb[5].mxu0 }
 0x293   :  { %v279_v44 = vpop.f32.mrb[6].mxu0 }
 0x294   :  { %v282_v45 = vmax.f32 %v277_v42, 0.0  ;;  %v430_v46 = vpop.f32.mrb[7].mxu0 }
 0x296   :  { %v283_v47 = vpack.c.bf16 %v282_v45, %v282_v45 }
 0x298   :  { %436 = vmatmul.mubr.msk.bf16.vlgmr.msra.gmra.mrb[8].mxu0 %vm46_vm1, %v283_v47 }
 0x36b   :  { %v341_v50 = vpop.f32.mrb[8].mxu0 }
 0x36c   :  { %v342_v51 = vadd.f32 %v341_v50, %v291_v49  ;;  %v437_v52 = vpop.f32.mrb[9].mxu0 }
 0x36d   :  { %v344_v53 = vpop.f32.mrb[10].mxu0 }
 0x36e   :  { %347 = vst [vmem:[%s583_s6] sm:$0xff] %v342_v51  ;;  %v438_v54 = vpop.f32.mrb[11].mxu0 }

</bundles_post_ra>
